<compile_context>
chip_gen: v6e
topology: v6e:2x2x1
jax: 0.10.0
libtpu: 0.0.40
codegen_flags: <defaults>
</compile_context>

<pallas_src>
import functools
import math

import jax
import jax.numpy as jnp
from jax.experimental import pallas as pl
from jax.experimental.pallas import tpu as pltpu


def _round_up(x, m):
    return ((x + m - 1) // m) * m


def _vae_disc_kernel(obs_ref, eps_ref,
                     w1_ref, whead_ref, wd1_ref, wd2_ref,
                     bias_ref, out_ref,
                     *, hidden_dim, latent_dim):
    # Static (zero-cost) views into the packed bias row; biases stay f32 and are
    # added after the f32 MXU accumulation.
    o = 0
    b1 = bias_ref[:, o:o + hidden_dim]; o += hidden_dim
    bhead = bias_ref[:, o:o + 2 * latent_dim]; o += 2 * latent_dim
    bd1 = bias_ref[:, o:o + hidden_dim]; o += hidden_dim
    bd2 = bias_ref[:, o:]

    # ---- VAE encoder: hidden = relu(obs @ W1 + b1)  (bf16 MXU inputs, f32 acc) ----
    h = jnp.dot(obs_ref[...], w1_ref[...], preferred_element_type=jnp.float32)
    h = jnp.maximum(h + b1, 0.0)

    # ---- fused mu / (0.5*log_var) head: single matmul, split the result ----
    head = jnp.dot(h.astype(jnp.bfloat16), whead_ref[...],
                   preferred_element_type=jnp.float32) + bhead
    mu = head[:, :latent_dim]
    half_log_var = head[:, latent_dim:]          # 0.5 already folded into whead/bhead

    # ---- reparameterize: z = mu + eps * exp(0.5 * log_var)  (f32 elementwise) ----
    z = mu + eps_ref[...] * jnp.exp(half_log_var)

    # ---- discriminator: relu(z @ Wd1 + bd1) @ Wd2 + bd2 ----
    d = jnp.dot(z.astype(jnp.bfloat16), wd1_ref[...],
                preferred_element_type=jnp.float32)
    d = jnp.maximum(d + bd1, 0.0)
    out = jnp.dot(d.astype(jnp.bfloat16), wd2_ref[...],
                  preferred_element_type=jnp.float32) + bd2

    out_ref[...] = out.astype(out_ref.dtype)     # lane-dense (out_pad = multiple of 128) store


def pack_params(params, n_skills):
    """One-time offline transform: fuse heads, fold 0.5, pack biases, pad logits to 128 lanes."""
    hidden_dim = params["w1"].shape[1]
    latent_dim = params["wmu"].shape[1]
    out_pad = _round_up(max(n_skills, 128), 128)

    w1 = params["w1"].astype(jnp.bfloat16)
    whead = jnp.concatenate([params["wmu"], 0.5 * params["wlv"]],
                            axis=1).astype(jnp.bfloat16)
    wd1 = params["wd1"].astype(jnp.bfloat16)
    wd2 = (jnp.zeros((hidden_dim, out_pad), jnp.float32)
           .at[:, :n_skills].set(params["wd2"])).astype(jnp.bfloat16)

    bias = jnp.concatenate([
        params["b1"].reshape(-1),
        params["bmu"].reshape(-1),
        0.5 * params["blv"].reshape(-1),
        params["bd1"].reshape(-1),
        jnp.zeros((out_pad,), jnp.float32).at[:n_skills].set(params["bd2"].reshape(-1)),
    ]).reshape(1, -1).astype(jnp.float32)

    return {"w1": w1, "whead": whead, "wd1": wd1, "wd2": wd2, "bias": bias,
            "hidden_dim": hidden_dim, "latent_dim": latent_dim,
            "n_skills": n_skills, "out_pad": out_pad}


def vae_discriminator_forward(obs, packed, eps, *, max_tile_b=256):
    """Fused VAE-encode + reparameterize + discriminator forward."""
    batch, obs_dim = obs.shape
    hidden_dim = packed["hidden_dim"]
    latent_dim = packed["latent_dim"]
    out_pad = packed["out_pad"]
    n_skills = packed["n_skills"]

    # Batch tiling: whole (8-row-aligned) batch if small, else 256-row tiles
    # (multiple of 128 → also matched to v5e's 4x128 MXU).
    padded_b = _round_up(batch, 8)
    tile_b = padded_b if padded_b <= max_tile_b else max_tile_b
    padded_b = _round_up(padded_b, tile_b)
    if padded_b != batch:
        pad = padded_b - batch
        obs = jnp.pad(obs, ((0, pad), (0, 0)))
        eps = jnp.pad(eps, ((0, pad), (0, 0)))

    obs_bf16 = obs.astype(jnp.bfloat16)
    eps_f32 = eps.astype(jnp.float32)
    total_bias = packed["bias"].shape[1]
    grid = (padded_b // tile_b,)

    kernel = functools.partial(_vae_disc_kernel,
                               hidden_dim=hidden_dim, latent_dim=latent_dim)

    out = pl.pallas_call(
        kernel,
        out_shape=jax.ShapeDtypeStruct((padded_b, out_pad), jnp.float32),
        grid=grid,
        in_specs=[
            pl.BlockSpec((tile_b, obs_dim), lambda i: (i, 0)),           # obs: tiled over batch
            pl.BlockSpec((tile_b, latent_dim), lambda i: (i, 0)),        # eps: tiled over batch
            pl.BlockSpec((obs_dim, hidden_dim), lambda i: (0, 0)),       # weights stay VMEM-resident
            pl.BlockSpec((hidden_dim, 2 * latent_dim), lambda i: (0, 0)),
            pl.BlockSpec((latent_dim, hidden_dim), lambda i: (0, 0)),
            pl.BlockSpec((hidden_dim, out_pad), lambda i: (0, 0)),
            pl.BlockSpec((1, total_bias), lambda i: (0, 0)),             # packed biases
        ],
        out_specs=pl.BlockSpec((tile_b, out_pad), lambda i: (i, 0)),
        compiler_params=pltpu.CompilerParams(dimension_semantics=("parallel",)),
    )(obs_bf16, eps_f32, packed["w1"], packed["whead"], packed["wd1"],
      packed["wd2"], packed["bias"])

    return out[:batch, :n_skills]


def init_params(key, obs_dim, hidden_dim, latent_dim, n_skills):
    """Deterministic synthetic parameters in the original (unfused, f32) torch layout."""
    ks = jax.random.split(key, 10)

    def lin(kw, fan_in, fan_out):
        scale = 1.0 / math.sqrt(fan_in)
        return jax.random.uniform(kw, (fan_in, fan_out), jnp.float32, -scale, scale)

    def bias(kb, fan_in, fan_out):
        scale = 1.0 / math.sqrt(fan_in)
        return jax.random.uniform(kb, (1, fan_out), jnp.float32, -scale, scale)

    return {
        # VAE encoder
        "w1":  lin(ks[0], obs_dim, hidden_dim),  "b1":  bias(ks[5], obs_dim, hidden_dim),
        "wmu": lin(ks[1], hidden_dim, latent_dim), "bmu": bias(ks[6], hidden_dim, latent_dim),
        "wlv": lin(ks[2], hidden_dim, latent_dim), "blv": bias(ks[7], hidden_dim, latent_dim),
        # Discriminator
        "wd1": lin(ks[3], latent_dim, hidden_dim), "bd1": bias(ks[8], latent_dim, hidden_dim),
        "wd2": lin(ks[4], hidden_dim, n_skills),   "bd2": bias(ks[9], hidden_dim, n_skills),
    }


def reference_forward(obs, params, eps):
    """Plain-JAX f32 reference (original unfused semantics)."""
    h = jnp.maximum(obs @ params["w1"] + params["b1"], 0.0)
    mu = h @ params["wmu"] + params["bmu"]
    log_var = h @ params["wlv"] + params["blv"]
    z = mu + eps * jnp.exp(0.5 * log_var)
    d = jnp.maximum(z @ params["wd1"] + params["bd1"], 0.0)
    return d @ params["wd2"] + params["bd2"]


if __name__ == "__main__":
    # Small shapes consistent with a DIAYN VAE-discriminator (flat observation vectors).
    batch, obs_dim, hidden_dim, latent_dim, n_skills = 8, 32, 32, 16, 8

    root = jax.random.PRNGKey(0)
    k_obs, k_eps, k_params = jax.random.split(root, 3)

    obs = jax.random.normal(k_obs, (batch, obs_dim), jnp.float32)
    # Deterministic reparameterization noise (stands in for torch.randn_like).
    # TODO(synk): could be generated in-kernel with pltpu.prng_seed/prng_random_bits;
    #             kept as an input so the reference comparison is exact in eps.
    eps = jax.random.normal(k_eps, (batch, latent_dim), jnp.float32)

    params = init_params(k_params, obs_dim, hidden_dim, latent_dim, n_skills)
    packed = pack_params(params, n_skills)

    out = vae_discriminator_forward(obs, packed, eps)
    out = jax.block_until_ready(out)

    ref = reference_forward(obs, params, eps)
    assert out.shape == (batch, n_skills)
    # bf16 matmul operands (f32 accumulation) -> loosened tolerance vs the f32 reference.
    assert jnp.allclose(out, ref, atol=5e-2, rtol=5e-2), "mismatch vs reference"

    print("KERNEL_OK")
</pallas_src>

<mosaic_0001>
module attributes {stable_mosaic.version = 11 : i64} {
  func.func @_vae_disc_kernel(%arg0: i32, %arg1: memref<8x32xbf16, #tpu.memory_space<vmem>>, %arg2: memref<8x16xf32, #tpu.memory_space<vmem>>, %arg3: memref<32x32xbf16, #tpu.memory_space<vmem>>, %arg4: memref<32x32xbf16, #tpu.memory_space<vmem>>, %arg5: memref<16x32xbf16, #tpu.memory_space<vmem>>, %arg6: memref<32x128xbf16, #tpu.memory_space<vmem>>, %arg7: memref<1x224xf32, #tpu.memory_space<vmem>>, %arg8: memref<8x128xf32, #tpu.memory_space<vmem>>) attributes {dimension_semantics = [#tpu.dimension_semantics<parallel>], iteration_bounds = array<i64: 1>, scalar_prefetch = 0 : i64, scratch_operands = 0 : i64, tpu.core_type = #tpu.core_type<tc>, window_params = [{transform_indices = @transform_0, window_bounds = array<i64: 8, 32>}, {transform_indices = @transform_1, window_bounds = array<i64: 8, 16>}, {pipeline_mode = #tpu.pipeline_mode<synchronous>, transform_indices = @transform_2, window_bounds = array<i64: 32, 32>}, {pipeline_mode = #tpu.pipeline_mode<synchronous>, transform_indices = @transform_3, window_bounds = array<i64: 32, 32>}, {pipeline_mode = #tpu.pipeline_mode<synchronous>, transform_indices = @transform_4, window_bounds = array<i64: 16, 32>}, {pipeline_mode = #tpu.pipeline_mode<synchronous>, transform_indices = @transform_5, window_bounds = array<i64: 32, 128>}, {pipeline_mode = #tpu.pipeline_mode<synchronous>, transform_indices = @transform_6, window_bounds = array<i64: 1, 224>}, {transform_indices = @transform_7, window_bounds = array<i64: 8, 128>}]} {
    %c0 = arith.constant 0 : index
    %c0_0 = arith.constant 0 : index
    %0 = vector.load %arg7[%c0, %c0_0] : memref<1x224xf32, #tpu.memory_space<vmem>>, vector<1x32xf32>
    %c0_1 = arith.constant 0 : index
    %c32 = arith.constant 32 : index
    %1 = vector.load %arg7[%c0_1, %c32] : memref<1x224xf32, #tpu.memory_space<vmem>>, vector<1x32xf32>
    %c0_2 = arith.constant 0 : index
    %c64 = arith.constant 64 : index
    %2 = vector.load %arg7[%c0_2, %c64] : memref<1x224xf32, #tpu.memory_space<vmem>>, vector<1x32xf32>
    %c0_3 = arith.constant 0 : index
    %c96 = arith.constant 96 : index
    %3 = vector.load %arg7[%c0_3, %c96] : memref<1x224xf32, #tpu.memory_space<vmem>>, vector<1x128xf32>
    %c0_4 = arith.constant 0 : index
    %c0_5 = arith.constant 0 : index
    %4 = vector.load %arg1[%c0_4, %c0_5] : memref<8x32xbf16, #tpu.memory_space<vmem>>, vector<8x32xbf16>
    %c0_6 = arith.constant 0 : index
    %c0_7 = arith.constant 0 : index
    %5 = vector.load %arg3[%c0_6, %c0_7] : memref<32x32xbf16, #tpu.memory_space<vmem>>, vector<32x32xbf16>
    %cst = arith.constant dense<0.000000e+00> : vector<8x32xf32>
    %6 = tpu.matmul %4, %5, %cst {dimension_numbers = #tpu.dot_dimension_numbers<[1], [0], [0], [1], [0, 0, 1, 1], [], []>} : vector<8x32xbf16>, vector<32x32xbf16>, vector<8x32xf32> -> vector<8x32xf32>
    %7 = vector.broadcast %0 : vector<1x32xf32> to vector<8x32xf32>
    %8 = arith.addf %6, %7 : vector<8x32xf32>
    %cst_8 = arith.constant 0.000000e+00 : f32
    %9 = vector.broadcast %cst_8 : f32 to vector<8x32xf32>
    %10 = arith.maximumf %8, %9 : vector<8x32xf32>
    %11 = arith.truncf %10 : vector<8x32xf32> to vector<8x32xbf16>
    %c0_9 = arith.constant 0 : index
    %c0_10 = arith.constant 0 : index
    %12 = vector.load %arg4[%c0_9, %c0_10] : memref<32x32xbf16, #tpu.memory_space<vmem>>, vector<32x32xbf16>
    %cst_11 = arith.constant dense<0.000000e+00> : vector<8x32xf32>
    %13 = tpu.matmul %11, %12, %cst_11 {dimension_numbers = #tpu.dot_dimension_numbers<[1], [0], [0], [1], [0, 0, 1, 1], [], []>} : vector<8x32xbf16>, vector<32x32xbf16>, vector<8x32xf32> -> vector<8x32xf32>
    %14 = vector.broadcast %1 : vector<1x32xf32> to vector<8x32xf32>
    %15 = arith.addf %13, %14 : vector<8x32xf32>
    %16 = vector.extract_strided_slice %15 {offsets = [0, 0], sizes = [8, 16], strides = [1, 1]} : vector<8x32xf32> to vector<8x16xf32>
    %17 = vector.extract_strided_slice %15 {offsets = [0, 16], sizes = [8, 16], strides = [1, 1]} : vector<8x32xf32> to vector<8x16xf32>
    %c0_12 = arith.constant 0 : index
    %c0_13 = arith.constant 0 : index
    %18 = vector.load %arg2[%c0_12, %c0_13] : memref<8x16xf32, #tpu.memory_space<vmem>>, vector<8x16xf32>
    %19 = math.exp %17 : vector<8x16xf32>
    %20 = arith.mulf %18, %19 : vector<8x16xf32>
    %21 = arith.addf %16, %20 : vector<8x16xf32>
    %22 = arith.truncf %21 : vector<8x16xf32> to vector<8x16xbf16>
    %c0_14 = arith.constant 0 : index
    %c0_15 = arith.constant 0 : index
    %23 = vector.load %arg5[%c0_14, %c0_15] : memref<16x32xbf16, #tpu.memory_space<vmem>>, vector<16x32xbf16>
    %cst_16 = arith.constant dense<0.000000e+00> : vector<8x32xf32>
    %24 = tpu.matmul %22, %23, %cst_16 {dimension_numbers = #tpu.dot_dimension_numbers<[1], [0], [0], [1], [0, 0, 1, 1], [], []>} : vector<8x16xbf16>, vector<16x32xbf16>, vector<8x32xf32> -> vector<8x32xf32>
    %25 = vector.broadcast %2 : vector<1x32xf32> to vector<8x32xf32>
    %26 = arith.addf %24, %25 : vector<8x32xf32>
    %cst_17 = arith.constant 0.000000e+00 : f32
    %27 = vector.broadcast %cst_17 : f32 to vector<8x32xf32>
    %28 = arith.maximumf %26, %27 : vector<8x32xf32>
    %29 = arith.truncf %28 : vector<8x32xf32> to vector<8x32xbf16>
    %c0_18 = arith.constant 0 : index
    %c0_19 = arith.constant 0 : index
    %30 = vector.load %arg6[%c0_18, %c0_19] : memref<32x128xbf16, #tpu.memory_space<vmem>>, vector<32x128xbf16>
    %cst_20 = arith.constant dense<0.000000e+00> : vector<8x128xf32>
    %31 = tpu.matmul %29, %30, %cst_20 {dimension_numbers = #tpu.dot_dimension_numbers<[1], [0], [0], [1], [0, 0, 1, 1], [], []>} : vector<8x32xbf16>, vector<32x128xbf16>, vector<8x128xf32> -> vector<8x128xf32>
    %32 = vector.broadcast %3 : vector<1x128xf32> to vector<8x128xf32>
    %33 = arith.addf %31, %32 : vector<8x128xf32>
    %c0_21 = arith.constant 0 : index
    %c0_22 = arith.constant 0 : index
    %34 = vector.load %arg8[%c0_21, %c0_22] : memref<8x128xf32, #tpu.memory_space<vmem>>, vector<8x128xf32>
    tpu.vector_store %arg8[%c0_21, %c0_22], %33 {strides = array<i32>} : memref<8x128xf32, #tpu.memory_space<vmem>>, vector<8x128xf32>,
    return
  }
  func.func @transform_0(%arg0: i32) -> (i32, i32) {
    %c0_i32 = arith.constant 0 : i32
    %c0_i32_0 = arith.constant 0 : i32
    return %arg0, %c0_i32 : i32, i32
  }
  func.func @transform_1(%arg0: i32) -> (i32, i32) {
    %c0_i32 = arith.constant 0 : i32
    %c0_i32_0 = arith.constant 0 : i32
    return %arg0, %c0_i32 : i32, i32
  }
  func.func @transform_2(%arg0: i32) -> (i32, i32) {
    %c0_i32 = arith.constant 0 : i32
    %c0_i32_0 = arith.constant 0 : i32
    %c0_i32_1 = arith.constant 0 : i32
    return %c0_i32, %c0_i32_0 : i32, i32
  }
  func.func @transform_3(%arg0: i32) -> (i32, i32) {
    %c0_i32 = arith.constant 0 : i32
    %c0_i32_0 = arith.constant 0 : i32
    %c0_i32_1 = arith.constant 0 : i32
    return %c0_i32, %c0_i32_0 : i32, i32
  }
  func.func @transform_4(%arg0: i32) -> (i32, i32) {
    %c0_i32 = arith.constant 0 : i32
    %c0_i32_0 = arith.constant 0 : i32
    %c0_i32_1 = arith.constant 0 : i32
    return %c0_i32, %c0_i32_0 : i32, i32
  }
  func.func @transform_5(%arg0: i32) -> (i32, i32) {
    %c0_i32 = arith.constant 0 : i32
    %c0_i32_0 = arith.constant 0 : i32
    %c0_i32_1 = arith.constant 0 : i32
    return %c0_i32, %c0_i32_0 : i32, i32
  }
  func.func @transform_6(%arg0: i32) -> (i32, i32) {
    %c0_i32 = arith.constant 0 : i32
    %c0_i32_0 = arith.constant 0 : i32
    %c0_i32_1 = arith.constant 0 : i32
    return %c0_i32, %c0_i32_0 : i32, i32
  }
  func.func @transform_7(%arg0: i32) -> (i32, i32) {
    %c0_i32 = arith.constant 0 : i32
    %c0_i32_0 = arith.constant 0 : i32
    return %arg0, %c0_i32 : i32, i32
  }
}

</mosaic_0001>

<bundles_post_ra>
// kernel: tpu_custom_call.1
= control target key start
LH: loop header
LB: loop body
LE: loop exit
PB: predicated region body
PF: predicated region fallthrough
CT: control target
= control target key end

     0   :  { %12 = vsyncpa [#allocation3], 0  ;;  %s727_s0 = inlined_call_operand.hbm [shape: bf16[8,32], index: 0, kind: input, shape index: {}]   ;;  %s728_s1 = inlined_call_operand.hbm [shape: f32[8,16], index: 1, kind: input, shape index: {}]   ;;  %s729_s2 = inlined_call_operand.hbm [shape: bf16[32,32], index: 2, kind: input, shape index: {}]   ;;  %s730_s3 = inlined_call_operand.hbm [shape: bf16[32,32], index: 3, kind: input, shape index: {}]   ;;  %s731_s4 = inlined_call_operand.hbm [shape: bf16[16,32], index: 4, kind: input, shape index: {}]   ;;  %s732_s5 = inlined_call_operand.hbm [shape: bf16[32,128], index: 5, kind: input, shape index: {}]   ;;  %s733_s6 = inlined_call_operand.vmem [shape: f32[1,224], index: 6, kind: input, shape index: {}]   ;;  %s734_s7 = inlined_call_operand.hbm [shape: f32[8,128], index: 7, kind: output, shape index: {}]  }
   0x1   :  { %13 = vsyncpa [#allocation6], 0 }
   0x2   :  { %14 = vsyncpa [#allocation9], 0 }
   0x3   :  { %15 = vsyncpa [#allocation12], 0 }
   0x4   :  { %16 = vsyncpa [#allocation4], 0  ;;  %s625_s24 = smov [#allocation5]  }
   0x5   :  { %s33_s25 = sshll.u32 %s625_s24, 4  ;;  %s34_s25 = int_to_ptr.vmem [resolvable:$true] %s33_s25 }
   0x6   :  { %s483_s26 = scalar_lea.vmem %s34_s25, 128  ;;  %p488_p1 = scmp.lt.s32.totalorder %s34_s25, %s34_s25 }
   0x7   :  { %p484_p0 = scmp.ne.s32.totalorder %s34_s25, %s483_s26  ;;  %p489_p2 = scmp.lt.s32.totalorder %s483_s26, %s483_s26 }
   0x9   :  { %p490_p3 = por %p489_p2, %p488_p1 }
   0xb   :  { %p491_p4 = pnand %p490_p3, %p484_p0 }
   0xd   :  { %494 = shalt.err (!%p491_p4)
}
   0xe   :  { %36 = dma.hbm_to_vmem [thread:$0]  %s728_s1, 128, %s34_s25, [#allocation6]  }
   0xf   :  { %s626_s29 = smov [#allocation8]   ;;  %s627_s8 = smov [#allocation2]  }
  0x10   :  { %s54_s30 = sshll.u32 %s626_s29, 4  ;;  %s23_s9 = sshll.u32 %s627_s8, 4  ;;  %s55_s30 = int_to_ptr.vmem [resolvable:$true] %s54_s30  ;;  %s24_s9 = int_to_ptr.vmem [resolvable:$true] %s23_s9 }
  0x11   :  { %s503_s10 = scalar_lea.vmem %s55_s30, 256  ;;  %p508_p6 = scmp.lt.s32.totalorder %s55_s30, %s55_s30 }
  0x12   :  { %p504_p5 = scmp.ne.s32.totalorder %s55_s30, %s503_s10  ;;  %p509_p7 = scmp.lt.s32.totalorder %s503_s10, %s503_s10 }
  0x14   :  { %p510_p8 = por %p509_p7, %p508_p6 }
  0x16   :  { %p511_p9 = pnand %p510_p8, %p504_p5 }
  0x18   :  { %514 = shalt.err (!%p511_p9)
}
  0x19   :  { %s628_s11 = smov 64   ;;  %s629_s12 = smov 4  }
  0x1a   :  { %60 = dma.hbm_to_vmem [thread:$0]  %s730_s3, 256, %s55_s30, [#allocation9], %s628_s11, %s628_s11, %s629_s12  }
  0x1b   :  { %s523_s1 = scalar_lea.vmem %s24_s9, 64  ;;  %p528_p11 = scmp.lt.s32.totalorder %s24_s9, %s24_s9 }
  0x1c   :  { %p524_p10 = scmp.ne.s32.totalorder %s24_s9, %s523_s1  ;;  %p529_p12 = scmp.lt.s32.totalorder %s523_s1, %s523_s1 }
  0x1e   :  { %p530_p13 = por %p529_p12, %p528_p11 }
  0x20   :  { %p531_p0 = pnand %p530_p13, %p524_p10 }
  0x22   :  { %534 = shalt.err (!%p531_p0)
}
  0x23   :  { %26 = dma.hbm_to_vmem [thread:$0]  %s727_s0, 64, %s24_s9, [#allocation3]  }
  0x24   :  { %s630_s17 = smov [#allocation7]   ;;  %s631_s19 = smov [#allocation10]  }
  0x25   :  { %s42_s18 = sshll.u32 %s630_s17, 4  ;;  %s66_s20 = sshll.u32 %s631_s19, 4  ;;  %s43_s18 = int_to_ptr.vmem [resolvable:$true] %s42_s18  ;;  %s67_s20 = int_to_ptr.vmem [resolvable:$true] %s66_s20 }
  0x26   :  { %s543_s21 = scalar_lea.vmem %s43_s18, 256  ;;  %p548_p2 = scmp.lt.s32.totalorder %s43_s18, %s43_s18 }
  0x27   :  { %p544_p1 = scmp.ne.s32.totalorder %s43_s18, %s543_s21  ;;  %p549_p3 = scmp.lt.s32.totalorder %s543_s21, %s543_s21 }
  0x29   :  { %p550_p4 = por %p549_p3, %p548_p2 }
  0x2b   :  { %p551_p5 = pnand %p550_p4, %p544_p1 }
  0x2d   :  { %554 = shalt.err (!%p551_p5)
}
  0x2e   :  { %48 = dma.hbm_to_vmem [thread:$0]  %s729_s2, 256, %s43_s18, [#allocation6], %s628_s11, %s628_s11, %s629_s12  }
  0x2f   :  { %s563_s0 = scalar_lea.vmem %s67_s20, 128  ;;  %p568_p7 = scmp.lt.s32.totalorder %s67_s20, %s67_s20 }
  0x30   :  { %p564_p6 = scmp.ne.s32.totalorder %s67_s20, %s563_s0  ;;  %p569_p8 = scmp.lt.s32.totalorder %s563_s0, %s563_s0 }
  0x32   :  { %p570_p9 = por %p569_p8, %p568_p7 }
  0x34   :  { %p571_p10 = pnand %p570_p9, %p564_p6 }
  0x36   :  { %574 = shalt.err (!%p571_p10)
}
  0x37   :  { %72 = dma.hbm_to_vmem [thread:$0]  %s731_s4, 128, %s67_s20, [#allocation9], %s628_s11, %s628_s11, %s629_s12  }
  0x38   :  { %s632_s25 = smov [#allocation11]  }
  0x39   :  { %s78_s26 = sshll.u32 %s632_s25, 4  ;;  %s79_s26 = int_to_ptr.vmem [resolvable:$true] %s78_s26 }
  0x3a   :  { %s583_s27 = scalar_lea.vmem %s79_s26, 256  ;;  %p588_p12 = scmp.lt.s32.totalorder %s79_s26, %s79_s26 }
  0x3b   :  { %p584_p11 = scmp.ne.s32.totalorder %s79_s26, %s583_s27  ;;  %p589_p13 = scmp.lt.s32.totalorder %s583_s27, %s583_s27 }
  0x3d   :  { %p590_p0 = por %p589_p13, %p588_p12 }
  0x3f   :  { %p591_p1 = pnand %p590_p0, %p584_p11 }
  0x41   :  { %594 = shalt.err (!%p591_p1)
}
  0x42   :  { %84 = dma.hbm_to_vmem [thread:$0]  %s732_s5, 256, %s79_s26, [#allocation12], %s628_s11, %s628_s11, %s629_s12  }
  0x43   :  { %615 = dma.done.wait [#allocation3], 64  }
  0x44   :  { %616 = vsyncadd [#allocation3], 4294967232 }
  0x45   :  { %617 = dma.done.wait [#allocation6], 384  }
  0x46   :  { %618 = vsyncadd [#allocation6], 4294966912 }
  0x47   :  { %619 = dma.done.wait [#allocation9], 384  }
  0x48   :  { %620 = vsyncadd [#allocation9], 4294966912 }
  0x49   :  { %621 = dma.done.wait [#allocation12], 256  }
  0x4a   :  { %622 = vsyncadd [#allocation12], 4294967040  ;;  %v633_v0 = vmov 0.0   ;;  %vm634_vm0 = vmmov 0   ;;  %v466_v1 = vld [vmem:[#allocation7 + $0x8] sm:$0xff]   ;;  %v467_v2 = vld [vmem:[#allocation7] sm:$0xff]   ;;  %v311_v30 = vlaneseq }
  0x4b   :  { %422 = vmatprep.subr.bf16.mxu0 %v633_v0  ;;  %426 = vmatprep.mubr.msk.bf16.mxu0 %vm634_vm0, %v633_v0  ;;  %v399_v3 = vld [vmem:[%s733_s6] ss:$0 sm:$0xff]  ;;  %vm131_vm1 = vcmask 261120   ;;  %v468_v5 = vld [vmem:[#allocation8 + $0x8] sm:$0xff]   ;;  %s635_s29 = smov 96   ;;  %v470_v14 = vld [vmem:[#allocation10] sm:$0xff]  }
  0x4c   :  { %430 = vmatprep.subr.bf16.mxu1 %v633_v0  ;;  %434 = vmatprep.mubr.msk.bf16.mxu1 %vm634_vm0, %v633_v0  ;;  %v108_v4 = vld [vmem:[#allocation2] sm:$0xf]  ;;  %s636_s30 = smov 112   ;;  %v239_v24 = vld [vmem:[#allocation5] sm:$0xff]  ;;  %vm260_vm2 = vcmask 130048   ;;  %v472_v29 = vld [vmem:[#allocation11] sm:$0xff]  }
  0x4d   :  { %423 = vmatpush3.bf16.msra.mxu0 %v466_v1  ;;  %257 = vrot.lane.b32.xlu1 %v399_v3, %s628_s11  ;;  %v469_v6 = vld [vmem:[#allocation8] sm:$0xff]   ;;  %v312_v31 = vshrl.u32 %v311_v30, 7  ;;  %s637_s10 = smov 32  }
  0x4e   :  { %424 = vmatprep.subr.bf16.mxu0 %v633_v0  ;;  %431 = vmatpush3.bf16.msra.mxu1 %v468_v5  ;;  %v471_v22 = vld [vmem:[#allocation11 + $0x8] sm:$0xff]  }
  0x4f   :  { %432 = vmatprep.subr.bf16.mxu1 %v633_v0  ;;  %193 = vrot.lane.b32.xlu0 %v399_v3, %s635_s29  ;;  %v107_v32 = vld [vmem:[%s733_s6] sm:$0x3]  ;;  %v313_v33 = vsub.s32 0, %v312_v31  ;;  %v317_v34 = vsub.s32 1, %v312_v31  ;;  %s638_s6 = smov [#allocation13]  }
  0x50   :  { %s387_s11 = sshll.u32 %s638_s6, 4  ;;  %s388_s11 = int_to_ptr.vmem [resolvable:$true] %s387_s11 }
  0x51   :  { %425 = vmatpush3.bf16.msra.mxu0 %v467_v2  ;;  %v314_v35 = vrot.slane %v107_v32, %v313_v33  ;;  %v318_v36 = vrot.slane %v107_v32, %v317_v34  ;;  %s595_s12 = scalar_lea.vmem %s388_s11, 128  ;;  %p600_p3 = scmp.lt.s32.totalorder %s388_s11, %s388_s11 }
  0x52   :  { %438 = vmatprep.subr.bf16.mxu0 %v633_v0  ;;  %433 = vmatpush3.bf16.msra.mxu1 %v469_v6  ;;  %p596_p2 = scmp.ne.s32.totalorder %s388_s11, %s595_s12  ;;  %p601_p4 = scmp.lt.s32.totalorder %s595_s12, %s595_s12 }
  0x53   :  { %444 = vmatprep.subr.bf16.mxu1 %v633_v0  ;;  %331 = vrot.lane.b32.xlu1 %v314_v35, %s637_s10 }
  0x54   :  { %427 = vmatmul.mubr.msk.bf16.vlgmr.msra.gmra.mxu0 %vm131_vm1, %v108_v4  ;;  %p602_p5 = por %p601_p4, %p600_p3 }
  0x55   :  { %440 = vmatprep.mubr.msk.bf16.mxu0 %vm634_vm0, %v633_v0  ;;  %439 = vmatpush3.bf16.msra.mxu0 %v470_v14 }
  0x56   :  { %p603_p6 = pnand %p602_p5, %p596_p2 }
  0xbf   :  { %v258_v37 = vpop.permute.xlu1 %257 }
  0xc1   :  { %v194_v15 = vpop.permute.xlu0 %193 }
  0xc5   :  { %v332_v45 = vpop.permute.xlu1 %331 }
 0x114   :  { %v169_v7 = vpop.f32.mrf.mxu0 }
 0x115   :  { %v170_v8 = vadd.f32 %v399_v3, %v169_v7 }
 0x116   :  { %v428_v9 = vpop.f32.mrf.mxu0 }
 0x117   :  { %v175_v10 = vmax.f32 %v170_v8, 0.0 }
 0x118   :  { %v172_v11 = vpop.f32.mrf.mxu0 }
 0x119   :  { %v176_v12 = vpack.c.bf16 %v175_v10, %v175_v10 }
 0x11a   :  { %v429_v13 = vpop.f32.mrf.mxu0 }
 0x11b   :  { %435 = vmatmul.mubr.msk.bf16.vlgmr.msra.gmra.mxu1 %vm131_vm1, %v176_v12 }
 0x11c   :  { %448 = vmatprep.mubr.msk.bf16.mxu1 %vm634_vm0, %v633_v0  ;;  %445 = vmatpush3.bf16.msra.mxu1 %v471_v22 }
 0x11d   :  { %446 = vmatprep.subr.bf16.mxu1 %v633_v0 }
 0x120   :  { %447 = vmatpush3.bf16.msra.mxu1 %v472_v29 }
 0x1db   :  { %v233_v16 = vpop.f32.mrf.mxu1 }
 0x1dc   :  { %v234_v17 = vadd.f32 %v233_v16, %v194_v15 }
 0x1dd   :  { %v436_v18 = vpop.f32.mrf.mxu1 }
 0x1de   :  { %v240_v19 = vmul.f32 1.442695, %v234_v17 }
 0x1df   :  { %v236_v20 = vpop.f32.mrf.mxu1 }
 0x1e0   :  { %473 = vpow2.f32 %v240_v19 }
 0x1e1   :  { %v437_v21 = vpop.f32.mrf.mxu1 }
 0x1ed   :  { %v474_v23 = vpop.eup %473 }
 0x1ee   :  { %243 = vrot.lane.b32.xlu0 %v474_v23, %s636_s30 }
 0x1f2   :  { %333 = vrot.lane.b32.xlu0 %v318_v36, %s637_s10 }
 0x260   :  { %v244_v25 = vpop.permute.xlu0 %243 }
 0x261   :  { %v246_v26 = vmul.f32 %v244_v25, %v239_v24 }
 0x263   :  { %v247_v27 = vadd.f32 %v246_v26, %v234_v17 }
 0x264   :  { %v334_v46 = vpop.permute.xlu0 %333 }
 0x265   :  { %v248_v28 = vpack.c.bf16 %v247_v27, %v247_v27  ;;  %v335_v47 = vsel %vm131_vm1, %v332_v45, %v334_v46 }
 0x267   :  { %441 = vmatmul.mubr.msk.bf16.vlgmr.msra.gmra.mxu0 %vm260_vm2, %v248_v28 }
 0x327   :  { %v298_v38 = vpop.f32.mrf.mxu0 }
 0x328   :  { %v299_v39 = vadd.f32 %v298_v38, %v258_v37 }
 0x329   :  { %v442_v40 = vpop.f32.mrf.mxu0 }
 0x32a   :  { %v304_v41 = vmax.f32 %v299_v39, 0.0 }
 0x32b   :  { %v301_v42 = vpop.f32.mrf.mxu0 }
 0x32c   :  { %v305_v43 = vpack.c.bf16 %v304_v41, %v304_v41 }
 0x32d   :  { %v443_v44 = vpop.f32.mrf.mxu0 }
 0x32e   :  { %449 = vmatmul.mubr.msk.bf16.vlgmr.msra.gmra.mxu1 %vm131_vm1, %v305_v43 }
 0x3ee   :  { %v374_v48 = vpop.f32.mrf.mxu1 }
 0x3ef   :  { %v375_v49 = vadd.f32 %v374_v48, %v335_v47 }
 0x3f0   :  { %v450_v50 = vpop.f32.mrf.mxu1 }
 0x3f1   :  { %380 = vst [vmem:[#allocation13] sm:$0xff] %v375_v49 }
 0x3f2   :  { %v377_v51 = vpop.f32.mrf.mxu1 }
 0x3f3   :  { %606 = shalt.err (!%p603_p6)
}
 0x3f4   :  { %390 = dma.vmem_to_hbm [thread:$0]  %s388_s11, 128, %s734_s7, [#allocation4]   ;;  %v451_v52 = vpop.f32.mrf.mxu1 }
 0x3f5   :  { %623 = dma.done.wait [#allocation4], 128  }
 0x3f6   :  { %624 = vsyncadd [#allocation4], 4294967168 }
 0x3f7   :  { %394 = vsyncpa [#allocation3], 1 }
 0x3f8   :  { %395 = vsyncpa [#allocation6], 1 }
 0x3f9   :  { %396 = vsyncpa [#allocation9], 1 }
 0x3fa   :  { %397 = vsyncpa [#allocation12], 1 }
 0x3fb   :  { %398 = vsyncpa [#allocation4], 1 }

</bundles_post_ra>
